<compile_context>
chip_gen: v7x
topology: tpu7x:2x2x1
jax: 0.10.0
libtpu: 0.0.40
codegen_flags: <defaults>
</compile_context>

<pallas_src>
import functools

import jax
import jax.numpy as jnp
from jax.experimental import pallas as pl
from jax.experimental.pallas import tpu as pltpu

KH = KW = 3
EPS = 1e-5


def _fused_kernel(gamma_ref, beta_ref, gdn_ref, gup_ref, x_ref, w_ref,
                  out_ref,
                  cache_ref, sum_ref, sumsq_ref, scale_ref, bias_ref,
                  *, rows, count, eps):
    """Fused conv3x3 + BatchNorm(train) + ReLU over a (phase, image) grid."""
    p = pl.program_id(0)
    n = pl.program_id(1)
    start = n * rows
    if rows % 8 == 0:
        start = pl.multiple_of(start, 8)

    @pl.when((p == 0) & (n == 0))
    def _init():
        sum_ref[...] = jnp.zeros_like(sum_ref)
        sumsq_ref[...] = jnp.zeros_like(sumsq_ref)

    @pl.when(p == 0)
    def _conv_and_stats():
        # x: whole padded image rows, (rows+2, (W+2)*Cin) bf16.  dx taps + Cin
        # are folded into the contraction by the banded weight; the 3 dy taps
        # are row-shifted slices of the same resident tile.
        x = x_ref[0]
        acc = jnp.dot(x[0:rows, :], w_ref[0],
                      preferred_element_type=jnp.float32)
        acc = acc + jnp.dot(x[1:rows + 1, :], w_ref[1],
                            preferred_element_type=jnp.float32)
        acc = acc + jnp.dot(x[2:rows + 2, :], w_ref[2],
                            preferred_element_type=jnp.float32)
        cache_ref[pl.ds(start, rows), :] = acc          # persistent VMEM cache
        sum_ref[...] += acc                             # full-vreg accumulate
        sumsq_ref[...] += acc * acc

    @pl.when((p == 1) & (n == 0))
    def _finalize_stats():
        # One-time fold: rows -> 1, then per-(w,c) lanes -> per-channel via a
        # tiny 0/1 matrix dot; broadcast scale/bias back to the lane layout.
        inv_cnt = 1.0 / float(count)
        srow = jnp.sum(sum_ref[...], axis=0, keepdims=True)      # (1, W*Cout)
        qrow = jnp.sum(sumsq_ref[...], axis=0, keepdims=True)
        s_c = jnp.dot(srow, gdn_ref[...], preferred_element_type=jnp.float32)
        q_c = jnp.dot(qrow, gdn_ref[...], preferred_element_type=jnp.float32)
        mean = s_c * inv_cnt                                      # (1, Cout)
        var = jnp.maximum(q_c * inv_cnt - mean * mean, 0.0)
        inv_std = jax.lax.rsqrt(var + eps)
        scale_c = gamma_ref[...] * inv_std
        bias_c = beta_ref[...] - mean * scale_c
        scale_ref[...] = jnp.dot(scale_c, gup_ref[...],
                                 preferred_element_type=jnp.float32)
        bias_ref[...] = jnp.dot(bias_c, gup_ref[...],
                                preferred_element_type=jnp.float32)

    @pl.when(p == 1)
    def _apply():
        y = cache_ref[pl.ds(start, rows), :] * scale_ref[...] + bias_ref[...]
        out_ref[...] = jnp.maximum(y, 0.0).astype(out_ref.dtype)


def inconv_forward(x_nchw, weight, gamma, beta, *, eps=EPS, out_dtype=None):
    """x_nchw: (N, Cin, H, W); weight: (Cout, Cin, 3, 3); gamma/beta: (Cout,)."""
    N, Cin, H, W = x_nchw.shape
    Cout = weight.shape[0]
    WC_in = (W + 2) * Cin                       # folded K dimension
    WC_out = W * Cout                           # lane-dense output dimension
    out_dtype = x_nchw.dtype if out_dtype is None else out_dtype

    # --- banded weight: dx taps + Cin folded into the contraction -------------
    # band[dy, (w+dx)*Cin + ci, w*Cout + co] = weight[co, ci, dy, dx]
    wt = jnp.transpose(weight, (2, 3, 1, 0)).reshape(KH, KW * Cin, Cout)
    band = jnp.zeros((KH, WC_in, WC_out), jnp.float32)
    for w in range(W):
        band = band.at[:, w * Cin:(w + KW) * Cin,
                       w * Cout:(w + 1) * Cout].set(wt)
    band = band.astype(jnp.bfloat16)

    # --- 0/1 group matrices for the in-kernel per-channel stats fold ----------
    eye = jnp.eye(Cout, dtype=jnp.float32)
    gup = jnp.tile(eye, (1, W))                 # (Cout, W*Cout): chan -> lanes
    gdn = gup.T                                 # (W*Cout, Cout): lanes -> chan
    gamma_row = gamma.reshape(1, Cout).astype(jnp.float32)
    beta_row = beta.reshape(1, Cout).astype(jnp.float32)

    # --- padded NHWC bf16 input; blocks are whole images (halo = the zero pad) -
    xh = jnp.transpose(x_nchw, (0, 2, 3, 1)).astype(jnp.bfloat16)   # (N,H,W,Cin)
    xp2 = jnp.pad(xh, ((0, 0), (1, 1), (1, 1), (0, 0))).reshape(N, H + 2, WC_in)

    kernel = functools.partial(_fused_kernel, rows=H, count=N * H * W, eps=eps)

    out2d = pl.pallas_call(
        kernel,
        grid=(2, N),   # (phase, image); phase outermost => stats before apply
        in_specs=[
            pl.BlockSpec((1, Cout), lambda p, n: (0, 0)),               # gamma
            pl.BlockSpec((1, Cout), lambda p, n: (0, 0)),               # beta
            pl.BlockSpec((WC_out, Cout), lambda p, n: (0, 0)),          # gdn
            pl.BlockSpec((Cout, WC_out), lambda p, n: (0, 0)),          # gup
            # whole padded image; pinned to block 0 during phase 1 -> no re-DMA
            pl.BlockSpec((1, H + 2, WC_in), lambda p, n: (n * (1 - p), 0, 0)),
            pl.BlockSpec((KH, WC_in, WC_out), lambda p, n: (0, 0, 0)),  # band
        ],
        # pinned to block 0 during phase 0 -> no garbage writeback in phase 0
        out_specs=pl.BlockSpec((H, WC_out), lambda p, n: (p * n, 0)),
        out_shape=jax.ShapeDtypeStruct((N * H, WC_out), out_dtype),
        scratch_shapes=[
            pltpu.VMEM((N * H, WC_out), jnp.float32),   # conv cache (persists)
            pltpu.VMEM((H, WC_out), jnp.float32),       # sum accumulator
            pltpu.VMEM((H, WC_out), jnp.float32),       # sum-of-squares accum
            pltpu.VMEM((1, WC_out), jnp.float32),       # BN scale row
            pltpu.VMEM((1, WC_out), jnp.float32),       # BN bias row
        ],
        compiler_params=pltpu.CompilerParams(
            # phases must run in order and the stats accumulate across images.
            dimension_semantics=("arbitrary", "arbitrary"),
            vmem_limit_bytes=48 * 1024 * 1024),
    )(gamma_row, beta_row, gdn, gup, xp2, band)

    # NHWC-flat -> NCHW to match the PyTorch module interface.  (If the
    # downstream consumer can take NHWC, skip this extra HBM pass.)
    return out2d.reshape(N, H, W, Cout).transpose(0, 3, 1, 2)


def _reference(x_nchw, weight, gamma, beta):
    # Pure-JAX f32 reference: conv3x3 (pad=1) + training-mode BN + ReLU, NCHW.
    y = jax.lax.conv_general_dilated(
        x_nchw, weight, window_strides=(1, 1), padding=((1, 1), (1, 1)),
        dimension_numbers=("NCHW", "OIHW", "NCHW"))
    mean = jnp.mean(y, axis=(0, 2, 3), keepdims=True)
    var = jnp.mean((y - mean) ** 2, axis=(0, 2, 3), keepdims=True)
    yhat = (y - mean) * jax.lax.rsqrt(var + EPS)
    yhat = gamma.reshape(1, -1, 1, 1) * yhat + beta.reshape(1, -1, 1, 1)
    return jnp.maximum(yhat, 0.0)


if __name__ == "__main__":
    key = jax.random.PRNGKey(0)
    k_x, k_w = jax.random.split(key)

    N, Cin, H, W = 2, 4, 16, 16
    Cout = 8

    x = jax.random.normal(k_x, (N, Cin, H, W), dtype=jnp.float32)
    weight = 0.1 * jax.random.normal(k_w, (Cout, Cin, KH, KW), dtype=jnp.float32)
    gamma = jnp.ones((Cout,), dtype=jnp.float32)   # fresh BatchNorm2d init
    beta = jnp.zeros((Cout,), dtype=jnp.float32)

    out = jax.block_until_ready(inconv_forward(x, weight, gamma, beta))
    ref = _reference(x, weight, gamma, beta)

    assert out.shape == (N, Cout, H, W)
    # bf16 MXU inputs -> relax tolerance vs the f32 reference.
    assert jnp.allclose(out, ref, atol=3e-2, rtol=3e-2), float(
        jnp.max(jnp.abs(out - ref)))

    print("KERNEL_OK")
</pallas_src>

<mosaic_0001>
module attributes {stable_mosaic.version = 11 : i64} {
  func.func @_fused_kernel(%arg0: i32, %arg1: i32, %arg2: memref<1x8xf32, #tpu.memory_space<vmem>>, %arg3: memref<1x8xf32, #tpu.memory_space<vmem>>, %arg4: memref<128x8xf32, #tpu.memory_space<vmem>>, %arg5: memref<8x128xf32, #tpu.memory_space<vmem>>, %arg6: memref<1x18x72xbf16, #tpu.memory_space<vmem>>, %arg7: memref<3x72x128xbf16, #tpu.memory_space<vmem>>, %arg8: memref<16x128xf32, #tpu.memory_space<vmem>>, %arg9: memref<32x128xf32, #tpu.memory_space<vmem>>, %arg10: memref<16x128xf32, #tpu.memory_space<vmem>>, %arg11: memref<16x128xf32, #tpu.memory_space<vmem>>, %arg12: memref<1x128xf32, #tpu.memory_space<vmem>>, %arg13: memref<1x128xf32, #tpu.memory_space<vmem>>) attributes {dimension_semantics = [#tpu.dimension_semantics<arbitrary>, #tpu.dimension_semantics<arbitrary>], iteration_bounds = array<i64: 2, 2>, scalar_prefetch = 0 : i64, scratch_operands = 5 : i64, tpu.core_type = #tpu.core_type<tc>, window_params = [{pipeline_mode = #tpu.pipeline_mode<synchronous>, transform_indices = @transform_0, window_bounds = array<i64: 1, 8>}, {pipeline_mode = #tpu.pipeline_mode<synchronous>, transform_indices = @transform_1, window_bounds = array<i64: 1, 8>}, {pipeline_mode = #tpu.pipeline_mode<synchronous>, transform_indices = @transform_2, window_bounds = array<i64: 128, 8>}, {pipeline_mode = #tpu.pipeline_mode<synchronous>, transform_indices = @transform_3, window_bounds = array<i64: 8, 128>}, {transform_indices = @transform_4, window_bounds = array<i64: 1, 18, 72>}, {pipeline_mode = #tpu.pipeline_mode<synchronous>, transform_indices = @transform_5, window_bounds = array<i64: 3, 72, 128>}, {transform_indices = @transform_6, window_bounds = array<i64: 16, 128>}]} {
    %c16_i32 = arith.constant 16 : i32
    %0 = arith.muli %arg1, %c16_i32 : i32
    %1 = tpu.assume_multiple %0, 8 : i32
    %c0_i32 = arith.constant 0 : i32
    %2 = arith.cmpi eq, %arg0, %c0_i32 : i32
    %c0_i32_0 = arith.constant 0 : i32
    %3 = arith.cmpi eq, %arg1, %c0_i32_0 : i32
    %4 = arith.andi %2, %3 : i1
    %5 = arith.extui %4 : i1 to i32
    %c0_i32_1 = arith.constant 0 : i32
    %6 = arith.cmpi ne, %5, %c0_i32_1 : i32
    scf.if %6 {
      %cst = arith.constant 0.000000e+00 : f32
      %18 = vector.broadcast %cst : f32 to vector<16x128xf32>
      %c0 = arith.constant 0 : index
      %c0_8 = arith.constant 0 : index
      %19 = vector.load %arg10[%c0, %c0_8] : memref<16x128xf32, #tpu.memory_space<vmem>>, vector<16x128xf32>
      tpu.vector_store %arg10[%c0, %c0_8], %18 {strides = array<i32>} : memref<16x128xf32, #tpu.memory_space<vmem>>, vector<16x128xf32>,
      %cst_9 = arith.constant 0.000000e+00 : f32
      %20 = vector.broadcast %cst_9 : f32 to vector<16x128xf32>
      %c0_10 = arith.constant 0 : index
      %c0_11 = arith.constant 0 : index
      %21 = vector.load %arg11[%c0_10, %c0_11] : memref<16x128xf32, #tpu.memory_space<vmem>>, vector<16x128xf32>
      tpu.vector_store %arg11[%c0_10, %c0_11], %20 {strides = array<i32>} : memref<16x128xf32, #tpu.memory_space<vmem>>, vector<16x128xf32>,
    } else {
    }
    %c0_i32_2 = arith.constant 0 : i32
    %7 = arith.cmpi eq, %arg0, %c0_i32_2 : i32
    %8 = arith.extui %7 : i1 to i32
    %c0_i32_3 = arith.constant 0 : i32
    %9 = arith.cmpi ne, %8, %c0_i32_3 : i32
    scf.if %9 {
      %c0 = arith.constant 0 : index
      %c0_8 = arith.constant 0 : index
      %c0_9 = arith.constant 0 : index
      %18 = vector.load %arg6[%c0, %c0_8, %c0_9] : memref<1x18x72xbf16, #tpu.memory_space<vmem>>, vector<1x18x72xbf16>
      %19 = vector.shape_cast %18 : vector<1x18x72xbf16> to vector<18x72xbf16>
      %20 = vector.extract_strided_slice %19 {offsets = [0, 0], sizes = [16, 72], strides = [1, 1]} : vector<18x72xbf16> to vector<16x72xbf16>
      %c0_10 = arith.constant 0 : index
      %c0_11 = arith.constant 0 : index
      %c0_12 = arith.constant 0 : index
      %21 = vector.load %arg7[%c0_10, %c0_11, %c0_12] : memref<3x72x128xbf16, #tpu.memory_space<vmem>>, vector<1x72x128xbf16>
      %22 = vector.shape_cast %21 : vector<1x72x128xbf16> to vector<72x128xbf16>
      %cst = arith.constant dense<0.000000e+00> : vector<16x128xf32>
      %23 = tpu.matmul %20, %22, %cst {dimension_numbers = #tpu.dot_dimension_numbers<[1], [0], [0], [1], [0, 0, 1, 1], [], []>} : vector<16x72xbf16>, vector<72x128xbf16>, vector<16x128xf32> -> vector<16x128xf32>
      %24 = vector.extract_strided_slice %19 {offsets = [1, 0], sizes = [16, 72], strides = [1, 1]} : vector<18x72xbf16> to vector<16x72xbf16>
      %c1 = arith.constant 1 : index
      %c0_13 = arith.constant 0 : index
      %c0_14 = arith.constant 0 : index
      %25 = vector.load %arg7[%c1, %c0_13, %c0_14] : memref<3x72x128xbf16, #tpu.memory_space<vmem>>, vector<1x72x128xbf16>
      %26 = vector.shape_cast %25 : vector<1x72x128xbf16> to vector<72x128xbf16>
      %cst_15 = arith.constant dense<0.000000e+00> : vector<16x128xf32>
      %27 = tpu.matmul %24, %26, %cst_15 {dimension_numbers = #tpu.dot_dimension_numbers<[1], [0], [0], [1], [0, 0, 1, 1], [], []>} : vector<16x72xbf16>, vector<72x128xbf16>, vector<16x128xf32> -> vector<16x128xf32>
      %28 = arith.addf %23, %27 : vector<16x128xf32>
      %29 = vector.extract_strided_slice %19 {offsets = [2, 0], sizes = [16, 72], strides = [1, 1]} : vector<18x72xbf16> to vector<16x72xbf16>
      %c2 = arith.constant 2 : index
      %c0_16 = arith.constant 0 : index
      %c0_17 = arith.constant 0 : index
      %30 = vector.load %arg7[%c2, %c0_16, %c0_17] : memref<3x72x128xbf16, #tpu.memory_space<vmem>>, vector<1x72x128xbf16>
      %31 = vector.shape_cast %30 : vector<1x72x128xbf16> to vector<72x128xbf16>
      %cst_18 = arith.constant dense<0.000000e+00> : vector<16x128xf32>
      %32 = tpu.matmul %29, %31, %cst_18 {dimension_numbers = #tpu.dot_dimension_numbers<[1], [0], [0], [1], [0, 0, 1, 1], [], []>} : vector<16x72xbf16>, vector<72x128xbf16>, vector<16x128xf32> -> vector<16x128xf32>
      %33 = arith.addf %28, %32 : vector<16x128xf32>
      %34 = arith.index_cast %1 : i32 to index
      %c0_19 = arith.constant 0 : index
      %35 = vector.load %arg9[%34, %c0_19] : memref<32x128xf32, #tpu.memory_space<vmem>>, vector<16x128xf32>
      tpu.vector_store %arg9[%34, %c0_19], %33 {strides = array<i32>} : memref<32x128xf32, #tpu.memory_space<vmem>>, vector<16x128xf32>,
      %c0_20 = arith.constant 0 : index
      %c0_21 = arith.constant 0 : index
      %36 = vector.load %arg10[%c0_20, %c0_21] : memref<16x128xf32, #tpu.memory_space<vmem>>, vector<16x128xf32>
      %37 = arith.addf %36, %33 : vector<16x128xf32>
      %c0_22 = arith.constant 0 : index
      %c0_23 = arith.constant 0 : index
      %38 = vector.load %arg10[%c0_22, %c0_23] : memref<16x128xf32, #tpu.memory_space<vmem>>, vector<16x128xf32>
      tpu.vector_store %arg10[%c0_22, %c0_23], %37 {strides = array<i32>} : memref<16x128xf32, #tpu.memory_space<vmem>>, vector<16x128xf32>,
      %c0_24 = arith.constant 0 : index
      %c0_25 = arith.constant 0 : index
      %39 = vector.load %arg11[%c0_24, %c0_25] : memref<16x128xf32, #tpu.memory_space<vmem>>, vector<16x128xf32>
      %40 = arith.mulf %33, %33 : vector<16x128xf32>
      %41 = arith.addf %39, %40 : vector<16x128xf32>
      %c0_26 = arith.constant 0 : index
      %c0_27 = arith.constant 0 : index
      %42 = vector.load %arg11[%c0_26, %c0_27] : memref<16x128xf32, #tpu.memory_space<vmem>>, vector<16x128xf32>
      tpu.vector_store %arg11[%c0_26, %c0_27], %41 {strides = array<i32>} : memref<16x128xf32, #tpu.memory_space<vmem>>, vector<16x128xf32>,
    } else {
    }
    %c1_i32 = arith.constant 1 : i32
    %10 = arith.cmpi eq, %arg0, %c1_i32 : i32
    %c0_i32_4 = arith.constant 0 : i32
    %11 = arith.cmpi eq, %arg1, %c0_i32_4 : i32
    %12 = arith.andi %10, %11 : i1
    %13 = arith.extui %12 : i1 to i32
    %c0_i32_5 = arith.constant 0 : i32
    %14 = arith.cmpi ne, %13, %c0_i32_5 : i32
    scf.if %14 {
      %c0 = arith.constant 0 : index
      %c0_8 = arith.constant 0 : index
      %18 = vector.load %arg10[%c0, %c0_8] : memref<16x128xf32, #tpu.memory_space<vmem>>, vector<16x128xf32>
      %cst = arith.constant dense<0.000000e+00> : vector<128xf32>
      %19 = vector.multi_reduction <add>, %18, %cst [0] : vector<16x128xf32> to vector<128xf32>
      %20 = vector.shape_cast %19 : vector<128xf32> to vector<1x128xf32>
      %c0_9 = arith.constant 0 : index
      %c0_10 = arith.constant 0 : index
      %21 = vector.load %arg11[%c0_9, %c0_10] : memref<16x128xf32, #tpu.memory_space<vmem>>, vector<16x128xf32>
      %cst_11 = arith.constant dense<0.000000e+00> : vector<128xf32>
      %22 = vector.multi_reduction <add>, %21, %cst_11 [0] : vector<16x128xf32> to vector<128xf32>
      %23 = vector.shape_cast %22 : vector<128xf32> to vector<1x128xf32>
      %c0_12 = arith.constant 0 : index
      %c0_13 = arith.constant 0 : index
      %24 = vector.load %arg4[%c0_12, %c0_13] : memref<128x8xf32, #tpu.memory_space<vmem>>, vector<128x8xf32>
      %cst_14 = arith.constant dense<0.000000e+00> : vector<1x8xf32>
      %25 = tpu.matmul %20, %24, %cst_14 {dimension_numbers = #tpu.dot_dimension_numbers<[1], [0], [0], [1], [0, 0, 1, 1], [], []>} : vector<1x128xf32>, vector<128x8xf32>, vector<1x8xf32> -> vector<1x8xf32>
      %c0_15 = arith.constant 0 : index
      %c0_16 = arith.constant 0 : index
      %26 = vector.load %arg4[%c0_15, %c0_16] : memref<128x8xf32, #tpu.memory_space<vmem>>, vector<128x8xf32>
      %cst_17 = arith.constant dense<0.000000e+00> : vector<1x8xf32>
      %27 = tpu.matmul %23, %26, %cst_17 {dimension_numbers = #tpu.dot_dimension_numbers<[1], [0], [0], [1], [0, 0, 1, 1], [], []>} : vector<1x128xf32>, vector<128x8xf32>, vector<1x8xf32> -> vector<1x8xf32>
      %cst_18 = arith.constant 0.001953125 : f32
      %28 = vector.broadcast %cst_18 : f32 to vector<1x8xf32>
      %29 = arith.mulf %25, %28 : vector<1x8xf32>
      %cst_19 = arith.constant 0.001953125 : f32
      %30 = vector.broadcast %cst_19 : f32 to vector<1x8xf32>
      %31 = arith.mulf %27, %30 : vector<1x8xf32>
      %32 = arith.mulf %29, %29 : vector<1x8xf32>
      %33 = arith.subf %31, %32 : vector<1x8xf32>
      %cst_20 = arith.constant 0.000000e+00 : f32
      %34 = vector.broadcast %cst_20 : f32 to vector<1x8xf32>
      %35 = arith.maximumf %33, %34 : vector<1x8xf32>
      %cst_21 = arith.constant 9.99999974E-6 : f32
      %36 = vector.broadcast %cst_21 : f32 to vector<1x8xf32>
      %37 = arith.addf %35, %36 : vector<1x8xf32>
      %38 = math.rsqrt %37 : vector<1x8xf32>
      %c0_22 = arith.constant 0 : index
      %c0_23 = arith.constant 0 : index
      %39 = vector.load %arg2[%c0_22, %c0_23] : memref<1x8xf32, #tpu.memory_space<vmem>>, vector<1x8xf32>
      %40 = arith.mulf %39, %38 : vector<1x8xf32>
      %c0_24 = arith.constant 0 : index
      %c0_25 = arith.constant 0 : index
      %41 = vector.load %arg3[%c0_24, %c0_25] : memref<1x8xf32, #tpu.memory_space<vmem>>, vector<1x8xf32>
      %42 = arith.mulf %29, %40 : vector<1x8xf32>
      %43 = arith.subf %41, %42 : vector<1x8xf32>
      %c0_26 = arith.constant 0 : index
      %c0_27 = arith.constant 0 : index
      %44 = vector.load %arg5[%c0_26, %c0_27] : memref<8x128xf32, #tpu.memory_space<vmem>>, vector<8x128xf32>
      %cst_28 = arith.constant dense<0.000000e+00> : vector<1x128xf32>
      %45 = tpu.matmul %40, %44, %cst_28 {dimension_numbers = #tpu.dot_dimension_numbers<[1], [0], [0], [1], [0, 0, 1, 1], [], []>} : vector<1x8xf32>, vector<8x128xf32>, vector<1x128xf32> -> vector<1x128xf32>
      %c0_29 = arith.constant 0 : index
      %c0_30 = arith.constant 0 : index
      %46 = vector.load %arg12[%c0_29, %c0_30] : memref<1x128xf32, #tpu.memory_space<vmem>>, vector<1x128xf32>
      tpu.vector_store %arg12[%c0_29, %c0_30], %45 {strides = array<i32>} : memref<1x128xf32, #tpu.memory_space<vmem>>, vector<1x128xf32>,
      %c0_31 = arith.constant 0 : index
      %c0_32 = arith.constant 0 : index
      %47 = vector.load %arg5[%c0_31, %c0_32] : memref<8x128xf32, #tpu.memory_space<vmem>>, vector<8x128xf32>
      %cst_33 = arith.constant dense<0.000000e+00> : vector<1x128xf32>
      %48 = tpu.matmul %43, %47, %cst_33 {dimension_numbers = #tpu.dot_dimension_numbers<[1], [0], [0], [1], [0, 0, 1, 1], [], []>} : vector<1x8xf32>, vector<8x128xf32>, vector<1x128xf32> -> vector<1x128xf32>
      %c0_34 = arith.constant 0 : index
      %c0_35 = arith.constant 0 : index
      %49 = vector.load %arg13[%c0_34, %c0_35] : memref<1x128xf32, #tpu.memory_space<vmem>>, vector<1x128xf32>
      tpu.vector_store %arg13[%c0_34, %c0_35], %48 {strides = array<i32>} : memref<1x128xf32, #tpu.memory_space<vmem>>, vector<1x128xf32>,
    } else {
    }
    %c1_i32_6 = arith.constant 1 : i32
    %15 = arith.cmpi eq, %arg0, %c1_i32_6 : i32
    %16 = arith.extui %15 : i1 to i32
    %c0_i32_7 = arith.constant 0 : i32
    %17 = arith.cmpi ne, %16, %c0_i32_7 : i32
    scf.if %17 {
      %18 = arith.index_cast %1 : i32 to index
      %c0 = arith.constant 0 : index
      %19 = vector.load %arg9[%18, %c0] : memref<32x128xf32, #tpu.memory_space<vmem>>, vector<16x128xf32>
      %c0_8 = arith.constant 0 : index
      %c0_9 = arith.constant 0 : index
      %20 = vector.load %arg12[%c0_8, %c0_9] : memref<1x128xf32, #tpu.memory_space<vmem>>, vector<1x128xf32>
      %21 = vector.broadcast %20 : vector<1x128xf32> to vector<16x128xf32>
      %22 = arith.mulf %19, %21 : vector<16x128xf32>
      %c0_10 = arith.constant 0 : index
      %c0_11 = arith.constant 0 : index
      %23 = vector.load %arg13[%c0_10, %c0_11] : memref<1x128xf32, #tpu.memory_space<vmem>>, vector<1x128xf32>
      %24 = vector.broadcast %23 : vector<1x128xf32> to vector<16x128xf32>
      %25 = arith.addf %22, %24 : vector<16x128xf32>
      %cst = arith.constant 0.000000e+00 : f32
      %26 = vector.broadcast %cst : f32 to vector<16x128xf32>
      %27 = arith.maximumf %25, %26 : vector<16x128xf32>
      %c0_12 = arith.constant 0 : index
      %c0_13 = arith.constant 0 : index
      %28 = vector.load %arg8[%c0_12, %c0_13] : memref<16x128xf32, #tpu.memory_space<vmem>>, vector<16x128xf32>
      tpu.vector_store %arg8[%c0_12, %c0_13], %27 {strides = array<i32>} : memref<16x128xf32, #tpu.memory_space<vmem>>, vector<16x128xf32>,
    } else {
    }
    return
  }
  func.func @transform_0(%arg0: i32, %arg1: i32) -> (i32, i32) {
    %c0_i32 = arith.constant 0 : i32
    %c0_i32_0 = arith.constant 0 : i32
    %c0_i32_1 = arith.constant 0 : i32
    return %c0_i32, %c0_i32_0 : i32, i32
  }
  func.func @transform_1(%arg0: i32, %arg1: i32) -> (i32, i32) {
    %c0_i32 = arith.constant 0 : i32
    %c0_i32_0 = arith.constant 0 : i32
    %c0_i32_1 = arith.constant 0 : i32
    return %c0_i32, %c0_i32_0 : i32, i32
  }
  func.func @transform_2(%arg0: i32, %arg1: i32) -> (i32, i32) {
    %c0_i32 = arith.constant 0 : i32
    %c0_i32_0 = arith.constant 0 : i32
    %c0_i32_1 = arith.constant 0 : i32
    return %c0_i32, %c0_i32_0 : i32, i32
  }
  func.func @transform_3(%arg0: i32, %arg1: i32) -> (i32, i32) {
    %c0_i32 = arith.constant 0 : i32
    %c0_i32_0 = arith.constant 0 : i32
    %c0_i32_1 = arith.constant 0 : i32
    return %c0_i32, %c0_i32_0 : i32, i32
  }
  func.func @transform_4(%arg0: i32, %arg1: i32) -> (i32, i32, i32) {
    %c1_i32 = arith.constant 1 : i32
    %0 = arith.subi %c1_i32, %arg0 : i32
    %1 = arith.muli %arg1, %0 : i32
    %c0_i32 = arith.constant 0 : i32
    %c0_i32_0 = arith.constant 0 : i32
    %c0_i32_1 = arith.constant 0 : i32
    return %1, %c0_i32, %c0_i32_0 : i32, i32, i32
  }
  func.func @transform_5(%arg0: i32, %arg1: i32) -> (i32, i32, i32) {
    %c0_i32 = arith.constant 0 : i32
    %c0_i32_0 = arith.constant 0 : i32
    %c0_i32_1 = arith.constant 0 : i32
    %c0_i32_2 = arith.constant 0 : i32
    return %c0_i32, %c0_i32_0, %c0_i32_1 : i32, i32, i32
  }
  func.func @transform_6(%arg0: i32, %arg1: i32) -> (i32, i32) {
    %0 = arith.muli %arg0, %arg1 : i32
    %c0_i32 = arith.constant 0 : i32
    %c0_i32_0 = arith.constant 0 : i32
    return %0, %c0_i32 : i32, i32
  }
}

</mosaic_0001>

<bundles_post_ra>
// kernel: tpu_custom_call.1
= control target key start
LH: loop header
LB: loop body
LE: loop exit
PB: predicated region body
PF: predicated region fallthrough
CT: control target
= control target key end

     0   :  { %11 = vsyncpa [#allocation8], 0  ;;  %s1905_s0 = inlined_call_operand.vmem [shape: f32[1,8], index: 0, kind: input, shape index: {}]   ;;  %s1906_s1 = inlined_call_operand.vmem [shape: f32[1,8], index: 1, kind: input, shape index: {}]   ;;  %s1907_s2 = inlined_call_operand.vmem [shape: f32[128,8], index: 2, kind: input, shape index: {}]   ;;  %s1908_s3 = inlined_call_operand.vmem [shape: f32[8,128], index: 3, kind: input, shape index: {}]   ;;  %s1909_s4 = inlined_call_operand.vmem [shape: bf16[2,18,72], index: 4, kind: input, shape index: {}]   ;;  %s1910_s5 = inlined_call_operand.vmem [shape: bf16[3,72,128], index: 5, kind: input, shape index: {}]   ;;  %s1911_s6 = inlined_call_operand.hbm [shape: f32[32,128], index: 6, kind: output, shape index: {}]  }
   0x1   :  { %13 = vsyncpa [#allocation8 + $0x1], 0  ;;  %s1585_s21 = smov 0   ;;  %s1587_s22 = smov 0  }
   0x2   :  { %s1589_s23 = smov 0   ;;  %s1591_s24 = smov 0  }
   0x3   :  { %s1593_s25 = smov 0   ;;  %s1595_s26 = smov 0  }
   0x4   :  { %s1597_s27 = smov 0   ;;  %s1599_s28 = smov 0  }
   0x5 LB: > { %s1056_s29 = sadd.s32 4294967295, %s1539_s28   ;;  %s1057_s30 = sadd.s32 4294967294, %s1539_s28   ;;  %s1539_s28 = sphi %s1599_s28, %s19_s28   ;;  %s1535_s27 = sphi %s1597_s27, %s1922_s27   ;;  %s1531_s26 = sphi %s1595_s26, %s1921_s26   ;;  %s1527_s25 = sphi %s1593_s25, %s1920_s25   ;;  %s1523_s24 = sphi %s1591_s24, %s1919_s24   ;;  %s1519_s23 = sphi %s1589_s23, %s1918_s23   ;;  %s1515_s22 = sphi %s1587_s22, %s1917_s22   ;;  %s1511_s21 = sphi %s1585_s21, %s1916_s21  }
   0x6   : > { %s28_s7 = sadd.s32 1, %s1531_s26  ;;  %s31_s8 = sadd.s32 1, %s1535_s27 }
   0x7   : > { %p29_p0 = scmp.ge.s32.totalorder %s28_s7, 2  ;;  %s170_s9 = smul.u32 %s1531_s26, %s1535_s27 }
   0x8   : > { %p185_p1 = scmp.ne.s32.totalorder %s1519_s23, %s1515_s22  ;;  %p186_p2 = scmp.eq.s32.totalorder %s1056_s29, 3 }
   0x9   : > { %s1924_s7 = smov (%p29_p0, %s28_s7), 0  ;;  %s1926_s8 = smov (!%p29_p0, %s31_s8), %s1535_s27 }
   0xa   : > { %p191_p3 = scmp.ne.s32.totalorder %s1515_s22, %s1511_s21  ;;  %p33_p4 = scmp.ge.s32.totalorder %s1926_s8, 2 }
   0xb   : > { %p192_p5 = scmp.eq.s32.totalorder %s1057_s30, 3  ;;  %p1638_p6 = por %p186_p2, %p185_p1 }
   0xc   : > { %p1060_p7 = scmp.ge.s32.totalorder %s1539_s28, 1  ;;  %s1928_s8 = smov (%p33_p4, %s1926_s8), 0 }
   0xd   : > { %p1645_p8 = por %p192_p5, %p191_p3  ;;  %p237_p9 = scmp.lt.s32.totalorder %s1539_s28, 5 }
   0xe   : > { %s171_s12 = smul.u32 %s1928_s8, %s1924_s7  ;;  %s175_s14 = sadd.s32 1, %s1519_s23 }
   0xf   : > { %p238_p10 = pnand %p1060_p7, %p237_p9 }
  0x10   : > { %s172_s13 = ssub.s32 %s170_s9, %s171_s12  ;;  %s1912_s16 = sand.u32 (!%p238_p10), 1, %s1515_s22  }
  0x11   : > { %p173_p11 = scmp.eq.s32.totalorder %s172_s13, 0  ;;  %241 = sbr.rel (%p238_p10) target bundleno = 824 (0x338), region = 44 }
  0x12   : > { %s269_s17 = ssub.s32 (!%p238_p10), 1, %s1527_s25  ;;  %s1061_s18 = sshll.u32 (!%p238_p10), %s1912_s16, 4 }
  0x13   : > { %s1654_s15 = scalar_select %p173_p11, %s1519_s23, %s175_s14  }
  0x14   : > { %s270_s19 = smul.u32 (!%p238_p10), %s1523_s24, %s269_s17  ;;  %s1063_s20 = sshll.u32 (!%p238_p10), %s1523_s24, 4 }
  0x15   : > { %p282_p13 = scmp.eq.s32.totalorder (!%p238_p10), %s1527_s25, 0  ;;  %p283_p0 = scmp.eq.s32.totalorder (!%p238_p10), %s1523_s24, 0 }
  0x16   : > { %p271_p12 = scmp.lt.s32.totalorder (!%p238_p10), %s270_s19, 1  ;;  %s1671_s13 = scalar_lea.vmem (!%p238_p10), [#allocation7], %s1061_s18 }
  0x17   : > { %p284_p1 = pnand (!%p238_p10), %p283_p0, %p282_p13 }
  0x18   : > { %s1930_s19 = smov (!%p271_p12, %s270_s19), 1  ;;  %v1541_v0 = vmov (!%p284_p1), 0.0  }
  0x19   : > { %s1346_s29 = smul.u32 12, %s1930_s19  ;;  %288 = vst [vmem:[#allocation3] sm:$0xff] (!%p284_p1), %v1541_v0  ;;  %289 = vst [vmem:[#allocation3 + $0x8] sm:$0xff] (!%p284_p1), %v1541_v0 }
  0x1a   : > { %287 = sbr.rel (%p284_p1) target bundleno = 33 (0x21), region = 48  ;;  %290 = vst [vmem:[#allocation4] sm:$0xff] (!%p284_p1), %v1541_v0  ;;  %291 = vst [vmem:[#allocation4 + $0x8] sm:$0xff] (!%p284_p1), %v1541_v0 }
  0x1b   : > { %s1669_s12 = scalar_lea.vmem %s1909_s4, %s1346_s29 }
  0x21 PF: > { %p1064_p2 = scmp.ne.s32.totalorder %s1527_s25, 0 }
  0x22   : > { %v1426_v1 = vld [vmem:[%s1910_s5] sm:$0xff] (!%p1064_p2)   ;;  %v1542_v2 = vmov (!%p1064_p2), 0.0   ;;  %v1427_v3 = vld [vmem:[%s1910_s5 + $0x8] sm:$0xff] (!%p1064_p2)   ;;  %vm1543_vm0 = vmmov (!%p1064_p2), 0   ;;  %v1428_v5 = vld [vmem:[%s1910_s5 + $0x10] sm:$0xff] (!%p1064_p2)   ;;  %vm369_vm1 = vcmask (!%p1064_p2), 1043456  }
  0x23   : > { %294 = sbr.rel (%p1064_p2) target bundleno = 296 (0x128), region = 52  ;;  %1184 = vmatprep.subr.bf16.mxu0 (!%p1064_p2), %v1542_v2  ;;  %1170 = vmatprep.subr.bf16.mxu1 (!%p1064_p2), %v1542_v2  ;;  %v1431_v4 = vld [vmem:[%s1910_s5 + $0x24] sm:$0xff] (!%p1064_p2)   ;;  %v1434_v7 = vld [vmem:[%s1910_s5 + $0x2c] sm:$0xff] (!%p1064_p2)   ;;  %v1430_v8 = vld [vmem:[%s1910_s5 + $0x20] ss:$0 sps:$4 sm:$0xff] (!%p1064_p2)   ;;  %vm365_vm2 = vcmask (!%p1064_p2), 588800  }
  0x24   : > { %1185 = vmatpush3.bf16.msra.mxu0 (!%p1064_p2), %v1426_v1  ;;  %1194 = vmatprep.mubr.msk.bf16.mxu0 (!%p1064_p2), %vm1543_vm0, %v1542_v2  ;;  %v1432_v6 = vld [vmem:[%s1669_s12] sm:$0xff] (!%p1064_p2)   ;;  %v1429_v9 = vld [vmem:[%s1910_s5 + $0x18] sm:$0xff] (!%p1064_p2)   ;;  %v444_v12 = vsel (!%p1064_p2), %vm369_vm1, %v1430_v8, 0  ;;  %v1441_v16 = vld [vmem:[%s1669_s12 + $0x8] ss:$0 sps:$4 sm:$0x11] (!%p1064_p2)  }
  0x25   : > { %1186 = vmatprep.subr.bf16.mxu0 (!%p1064_p2), %v1542_v2  ;;  %1180 = vmatprep.mubr.msk.bf16.mxu1 (!%p1064_p2), %vm1543_vm0, %v1542_v2  ;;  %v329_v10 = vshll.u32 (!%p1064_p2), %v1432_v6, 16  ;;  %v1436_v11 = vld [vmem:[%s1910_s5 + $0x34] sm:$0xff] (!%p1064_p2)   ;;  %v327_v13 = vshrl.u32 (!%p1064_p2), %v1432_v6, 16  ;;  %v1438_v15 = vld [vmem:[%s1910_s5 + $0x3c] sm:$0xff] (!%p1064_p2)   ;;  %v1440_v17 = vld [vmem:[%s1910_s5 + $0x44] ss:$0 sps:$4 sm:$0xff] (!%p1064_p2)  }
  0x26   : > { %1171 = vmatpush3.bf16.msra.mxu1 (!%p1064_p2), %v1431_v4  ;;  %v334_v18 = vshll.u32 (!%p1064_p2), %v1441_v16, 16  ;;  %v1433_v19 = vld [vmem:[%s1910_s5 + $0x48] sm:$0xff] (!%p1064_p2)   ;;  %v371_v22 = vsel (!%p1064_p2), %vm369_vm1, %v1440_v17, 0  ;;  %vm325_vm3 = vsmask.f32 (!%p1064_p2), 7424  ;;  %v1435_v23 = vld [vmem:[%s1910_s5 + $0x50] sm:$0xff] (!%p1064_p2)  }
  0x27   : > { %1172 = vmatprep.subr.bf16.mxu1 (!%p1064_p2), %v1542_v2  ;;  %v331_v14 = vrot.slane (!%p1064_p2), %v329_v10, 1  ;;  %v1437_v25 = vld [vmem:[%s1910_s5 + $0x58] sm:$0xff] (!%p1064_p2)   ;;  %v1439_v26 = vld [vmem:[%s1910_s5 + $0x60] sm:$0xff] (!%p1064_p2)   ;;  %v1442_v27 = vld [vmem:[%s1910_s5 + $0x68] ss:$0 sps:$4 sm:$0xff] (!%p1064_p2)   ;;  %v498_v28 = vrot.slane (!%p1064_p2), %v1432_v6, 1 }
  0x28   : > { %1187 = vmatpush3.bf16.msra.mxu0 (!%p1064_p2), %v1427_v3  ;;  %v336_v21 = vrot.slane (!%p1064_p2), %v334_v18, 1  ;;  %v499_v29 = vrot.slane (!%p1064_p2), %v1441_v16, 1  ;;  %v532_v30 = vsel (!%p1064_p2), %vm369_vm1, %v1442_v27, 0  ;;  %vm497_vm4 = vcmask (!%p1064_p2), 1046528   ;;  %v580_v37 = vld [vmem:[#allocation3] sm:$0xff] (!%p1064_p2)  ;;  %v586_v40 = vld [vmem:[#allocation4] sm:$0xff] (!%p1064_p2) }
  0x29   : > { %1188 = vmatprep.subr.bf16.mxu0 (!%p1064_p2), %v1542_v2  ;;  %v332_v20 = vor.u32 (!%p1064_p2), %v331_v14, %v327_v13  ;;  %v581_v42 = vld [vmem:[#allocation3 + $0x8] sm:$0xff] (!%p1064_p2)  ;;  %s577_s30 = scalar_lea.vmem (!%p1064_p2), [#allocation2], %s1063_s20  ;;  %v587_v47 = vld [vmem:[#allocation4 + $0x8] sm:$0xff] (!%p1064_p2) }
  0x2a   : > { %1173 = vmatpush3.bf16.msra.mxu1 %v1434_v7  ;;  %v500_v31 = vsel %vm497_vm4, %v498_v28, %v499_v29 }
  0x2b   : > { %1174 = vmatprep.subr.bf16.mxu1 %v1542_v2  ;;  %v337_v24 = vsel %vm325_vm3, %v332_v20, %v336_v21 }
  0x2c   : > { %1189 = vmatpush3.bf16.msra.mxu0 %v1428_v5 }
  0x2d   : > { %1190 = vmatprep.subr.bf16.mxu0 %v1542_v2 }
  0x2e   : > { %1175 = vmatpush3.bf16.msra.mxu1 %v1436_v11 }
  0x2f   : > { %1176 = vmatprep.subr.bf16.mxu1 %v1542_v2 }
  0x30   : > { %1191 = vmatpush3.bf16.msra.mxu0 %v1429_v9 }
  0x31   : > { %1192 = vmatprep.subr.bf16.mxu0 %v1542_v2 }
  0x32   : > { %1177 = vmatpush3.bf16.msra.mxu1 %v1438_v15 }
  0x33   : > { %1178 = vmatprep.subr.bf16.mxu1 %v1542_v2 }
  0x34   : > { %1193 = vmatpush3.bf16.msra.mxu0 %v444_v12 }
  0x35   : > { %1198 = vmatprep.subr.bf16.mxu0 %v1542_v2 }
  0x36   : > { %1179 = vmatpush3.bf16.msra.mxu1 %v371_v22 }
  0x37   : > { %1195 = vmatmul.mubr.msk.bf16.vlgmr.msra.gmra.mrb[0].mxu0 %vm365_vm2, %v1432_v6 }
  0x38   : > { %1199 = vmatpush3.bf16.msra.mxu0 %v1433_v19  ;;  %1208 = vmatprep.mubr.msk.bf16.mxu0 %vm1543_vm0, %v1542_v2 }
  0x39   : > { %1200 = vmatprep.subr.bf16.mxu0 %v1542_v2  ;;  %1181 = vmatmul.mubr.msk.bf16.vlgmr.msra.gmra.mrb[0].mxu1 %vm365_vm2, %v337_v24 }
  0x3c   : > { %1201 = vmatpush3.bf16.msra.mxu0 %v1435_v23 }
  0x3d   : > { %1202 = vmatprep.subr.bf16.mxu0 %v1542_v2 }
  0x40   : > { %1203 = vmatpush3.bf16.msra.mxu0 %v1437_v25 }
  0x41   : > { %1204 = vmatprep.subr.bf16.mxu0 %v1542_v2 }
  0x44   : > { %1205 = vmatpush3.bf16.msra.mxu0 %v1439_v26 }
  0x45   : > { %1206 = vmatprep.subr.bf16.mxu0 %v1542_v2 }
  0x48   : > { %1207 = vmatpush3.bf16.msra.mxu0 %v532_v30 }
  0x4b   : > { %1209 = vmatmul.mubr.msk.bf16.vlgmr.msra.gmra.mrb[0].mxu0 %vm365_vm2, %v500_v31 }
 0x10c   : > { %v407_v32 = vpop.f32.mrb[0].mxu1 }
 0x10d   : > { %v1182_v33 = vpop.f32.mrb[1].mxu1 }
 0x10e   : > { %v410_v34 = vpop.f32.mrb[2].mxu1 }
 0x10f   : > { %v1183_v35 = vpop.f32.mrb[3].mxu1 }
 0x11e   : > { %v568_v36 = vpop.f32.mrb[0].mxu0 }
 0x11f   : > { %v1340_v38 = vadd.f32 %v568_v36, %v407_v32  ;;  %v1210_v39 = vpop.f32.mrb[1].mxu0 }
 0x120   : > { %v571_v41 = vpop.f32.mrb[2].mxu0 }
 0x121   : > { %578 = vst [vmem:[%s577_s30] sm:$0xff] %v1340_v38  ;;  %v582_v43 = vadd.f32 %v1340_v38, %v580_v37  ;;  %v588_v44 = vmul.f32 %v1340_v38, %v1340_v38  ;;  %v1341_v45 = vadd.f32 %v571_v41, %v410_v34  ;;  %v1211_v46 = vpop.f32.mrb[3].mxu0 }
 0x123   : > { %584 = vst [vmem:[#allocation3] sm:$0xff] %v582_v43  ;;  %v590_v48 = vadd.f32 %v588_v44, %v586_v40  ;;  %579 = vst [vmem:[%s577_s30 + $0x8] sm:$0xff] %v1341_v45  ;;  %v583_v49 = vadd.f32 %v1341_v45, %v581_v42  ;;  %v589_v50 = vmul.f32 %v1341_v45, %v1341_v45 }
 0x125   : > { %592 = vst [vmem:[#allocation4] sm:$0xff] %v590_v48  ;;  %585 = vst [vmem:[#allocation3 + $0x8] sm:$0xff] %v583_v49  ;;  %v591_v51 = vadd.f32 %v589_v50, %v587_v47 }
 0x127   : > { %593 = vst [vmem:[#allocation4 + $0x8] sm:$0xff] %v591_v51 }
 0x128 PF: > { %p594_p3 = scmp.eq.s32.totalorder %s1527_s25, 1 }
 0x12a   : > { %p595_p4 = pnand %p594_p3, %p283_p0 }
 0x12b   : > { %v617_v52 = vld [vmem:[%s1907_s2] sm:$0xff] (!%p595_p4)  ;;  %v618_v53 = vld [vmem:[%s1907_s2 + $0x8] sm:$0xff] (!%p595_p4)  ;;  %v619_v54 = vld [vmem:[%s1907_s2 + $0x10] sm:$0xff] (!%p595_p4)  ;;  %v1544_v55 = vmov (!%p595_p4), 0.0|0.0   ;;  %vm1545_vm5 = vmmov (!%p595_p4), 0   ;;  %v1546_v58 = vmov (!%p595_p4), 0.0  }
 0x12c   : > { %598 = sbr.rel (%p595_p4) target bundleno = 785 (0x311), region = 56  ;;  %1292 = vmatprep.subr.bf16.mxu0 (!%p595_p4), %v1544_v55  ;;  %v1293_v56 = vpack.c.bf16 (!%p595_p4), %v618_v53, %v617_v52  ;;  %1316 = vmatprep.subr.bf16.mxu1 (!%p595_p4), %v1544_v55  ;;  %v620_v57 = vld [vmem:[%s1907_s2 + $0x18] sm:$0xff] (!%p595_p4)  ;;  %v621_v60 = vld [vmem:[%s1907_s2 + $0x20] sm:$0xff] (!%p595_p4)  ;;  %v622_v61 = vld [vmem:[%s1907_s2 + $0x28] sm:$0xff] (!%p595_p4)  ;;  %vm786_vm6 = vcmask (!%p595_p4), 64512  }
 0x12d   : > { %1244 = vmatprep.mubr.msk.f32.mxu0 (!%p595_p4), %vm1545_vm5, %v1546_v58  ;;  %1279 = vmatprep.mubr.msk.f32.mxu1 (!%p595_p4), %vm1545_vm5, %v1546_v58  ;;  %v1296_v59 = vpack.c.bf16 (!%p595_p4), %v620_v57, %v619_v54  ;;  %v599_v62 = vld [vmem:[#allocation3] sm:$0xff] (!%p595_p4)  ;;  %v600_v63 = vld [vmem:[#allocation3 + $0x8] sm:$0xff] (!%p595_p4)  ;;  %v608_v1 = vld [vmem:[#allocation4] sm:$0xff] (!%p595_p4)  ;;  %v1299_v3 = vpack.c.bf16 (!%p595_p4), %v622_v61, %v621_v60 }
 0x12e   : > { %1294 = vmatpush3.bf16.msra.mxu0 (!%p595_p4), %v1293_v56  ;;  %1318 = vmatpush3.bf16.msra.mxu1 (!%p595_p4), %v1293_v56  ;;  %v601_v0 = vadd.f32 (!%p595_p4), %v600_v63, %v599_v62  ;;  %v609_v2 = vld [vmem:[#allocation4 + $0x8] sm:$0xff] (!%p595_p4)  ;;  %v623_v5 = vld [vmem:[%s1907_s2 + $0x30] sm:$0xff] (!%p595_p4)  ;;  %v625_v10 = vld [vmem:[%s1907_s2 + $0x40] sm:$0xff] (!%p595_p4) }
 0x12f   : > { %1295 = vmatprep.subr.bf16.mxu0 (!%p595_p4), %v1544_v55  ;;  %1319 = vmatprep.subr.bf16.mxu1 (!%p595_p4), %v1544_v55  ;;  %v610_v4 = vadd.f32 (!%p595_p4), %v609_v2, %v608_v1  ;;  %v624_v6 = vld [vmem:[%s1907_s2 + $0x38] sm:$0xff] (!%p595_p4)  ;;  %v626_v11 = vld [vmem:[%s1907_s2 + $0x48] sm:$0xff] (!%p595_p4)  ;;  %v627_v15 = vld [vmem:[%s1907_s2 + $0x50] sm:$0xff] (!%p595_p4) }
 0x130   : > { %v602_v7 = vrot.slane (!%p595_p4), %v601_v0, 4  ;;  %v1302_v9 = vpack.c.bf16 (!%p595_p4), %v624_v6, %v623_v5  ;;  %v1305_v14 = vpack.c.bf16 (!%p595_p4), %v626_v11, %v625_v10  ;;  %v628_v16 = vld [vmem:[%s1907_s2 + $0x58] sm:$0xff] (!%p595_p4)  ;;  %v629_v20 = vld [vmem:[%s1907_s2 + $0x60] sm:$0xff] (!%p595_p4)  ;;  %v630_v21 = vld [vmem:[%s1907_s2 + $0x68] sm:$0xff] (!%p595_p4) }
 0x131   : > { %v611_v8 = vrot.slane (!%p595_p4), %v610_v4, 4  ;;  %v1308_v19 = vpack.c.bf16 (!%p595_p4), %v628_v16, %v627_v15  ;;  %v1311_v24 = vpack.c.bf16 (!%p595_p4), %v630_v21, %v629_v20  ;;  %v631_v25 = vld [vmem:[%s1907_s2 + $0x70] sm:$0xff] (!%p595_p4)  ;;  %v632_v26 = vld [vmem:[%s1907_s2 + $0x78] sm:$0xff] (!%p595_p4)  ;;  %v785_v32 = vld [vmem:[%s1908_s3] sm:$0xff] (!%p595_p4) }
 0x132   : > { %1297 = vmatpush3.bf16.msra.mxu0 (!%p595_p4), %v1296_v59  ;;  %1321 = vmatpush3.bf16.msra.mxu1 (!%p595_p4), %v1296_v59  ;;  %v603_v12 = vadd.f32 (!%p595_p4), %v602_v7, %v601_v0  ;;  %v1314_v29 = vpack.c.bf16 (!%p595_p4), %v632_v26, %v631_v25  ;;  %v780_v43 = vld [vmem:[%s1905_s0] sm:$0x1] (!%p595_p4) }
 0x133   : > { %1298 = vmatprep.subr.bf16.mxu0 %v1544_v55  ;;  %1322 = vmatprep.subr.bf16.mxu1 %v1544_v55  ;;  %v612_v13 = vadd.f32 %v611_v8, %v610_v4  ;;  %v782_v46 = vld [vmem:[%s1906_s1] sm:$0x1] }
 0x134   : > { %v604_v17 = vrot.slane %v603_v12, 2 }
 0x135   : > { %v613_v18 = vrot.slane %v612_v13, 2 }
 0x136   : > { %1300 = vmatpush3.bf16.msra.mxu0 %v1299_v3  ;;  %1324 = vmatpush3.bf16.msra.mxu1 %v1299_v3  ;;  %v605_v22 = vadd.f32 %v604_v17, %v603_v12 }
 0x137   : > { %1301 = vmatprep.subr.bf16.mxu0 %v1544_v55  ;;  %1325 = vmatprep.subr.bf16.mxu1 %v1544_v55  ;;  %v614_v23 = vadd.f32 %v613_v18, %v612_v13 }
 0x138   : > { %v606_v27 = vrot.slane %v605_v22, 1 }
 0x139   : > { %v615_v28 = vrot.slane %v614_v23, 1 }
 0x13a   : > { %1303 = vmatpush3.bf16.msra.mxu0 %v1302_v9  ;;  %1327 = vmatpush3.bf16.msra.mxu1 %v1302_v9  ;;  %v607_v30 = vadd.f32 %v606_v27, %v605_v22 }
 0x13b   : > { %1304 = vmatprep.subr.bf16.mxu0 %v1544_v55  ;;  %1328 = vmatprep.subr.bf16.mxu1 %v1544_v55  ;;  %v616_v31 = vadd.f32 %v615_v28, %v614_v23 }
 0x13e   : > { %1306 = vmatpush3.bf16.msra.mxu0 %v1305_v14  ;;  %1330 = vmatpush3.bf16.msra.mxu1 %v1305_v14 }
 0x13f   : > { %1307 = vmatprep.subr.bf16.mxu0 %v1544_v55  ;;  %1331 = vmatprep.subr.bf16.mxu1 %v1544_v55 }
 0x142   : > { %1309 = vmatpush3.bf16.msra.mxu0 %v1308_v19  ;;  %1333 = vmatpush3.bf16.msra.mxu1 %v1308_v19 }
 0x143   : > { %1310 = vmatprep.subr.bf16.mxu0 %v1544_v55  ;;  %1334 = vmatprep.subr.bf16.mxu1 %v1544_v55 }
 0x146   : > { %1312 = vmatpush3.bf16.msra.mxu0 %v1311_v24  ;;  %1336 = vmatpush3.bf16.msra.mxu1 %v1311_v24 }
 0x147   : > { %1313 = vmatprep.subr.bf16.mxu0 %v1544_v55  ;;  %1337 = vmatprep.subr.bf16.mxu1 %v1544_v55 }
 0x14a   : > { %1315 = vmatpush3.bf16.msra.mxu0 %v1314_v29  ;;  %1339 = vmatpush3.bf16.msra.mxu1 %v1314_v29 }
 0x14b   : > { %1282 = vmatprep.subr.mxu0 %v1546_v58  ;;  %1287 = vmatprep.subr.mxu1 %v1546_v58 }
 0x14d   : > { %1245 = vmatmul.mubr.f32.vlgmr.msra.gmra.mrb[0].mxu0 %v607_v30  ;;  %1280 = vmatmul.mubr.f32.vlgmr.msra.gmra.mrb[0].mxu1 %v616_v31 }
 0x14e   : > { %1284 = vmatprep.mubr.msk.f32.mxu0 %vm1545_vm5, %v1546_v58  ;;  %1289 = vmatprep.mubr.msk.f32.mxu1 %vm1545_vm5, %v1546_v58 }
 0x14f   : > { %1283 = vmatpush3.msra.mxu0 %v785_v32  ;;  %1288 = vmatpush3.msra.mxu1 %v785_v32 }
 0x220   : > { %v699_v33 = vpop.f32.mrb[0].mxu0  ;;  %v769_v34 = vpop.f32.mrb[0].mxu1 }
 0x221   : > { %v773_v35 = vmul.f32 0.001953125, %v699_v33  ;;  %v1246_v36 = vpop.f32.mrb[1].mxu0  ;;  %v774_v37 = vmul.f32 0.001953125, %v769_v34  ;;  %v1281_v38 = vpop.f32.mrb[1].mxu1 }
 0x223   : > { %v775_v39 = vmul.f32 %v773_v35, %v773_v35 }
 0x225   : > { %v776_v40 = vsub.f32 %v774_v37, %v775_v39 }
 0x227   : > { %v777_v41 = vmax.f32 %v776_v40, 0.0 }
 0x229   : > { %v778_v42 = vadd.f32 1e-05, %v777_v41 }
 0x22b   : > { %1443 = vrsqrt.f32 %v778_v42 }
 0x235   : > { %v1444_v44 = vpop.eup %1443 }
 0x236   : > { %v781_v45 = vmul.f32 %v1444_v44, %v780_v43 }
 0x238   : > { %1285 = vmatmul.mubr.msk.f32.vlgmr.msra.gmra.mrb[2].mxu0 %vm786_vm6, %v781_v45  ;;  %v783_v47 = vmul.f32 %v781_v45, %v773_v35 }
 0x23a   : > { %v784_v48 = vsub.f32 %v782_v46, %v783_v47 }
 0x23c   : > { %1290 = vmatmul.mubr.msk.f32.vlgmr.msra.gmra.mrb[2].mxu1 %vm786_vm6, %v784_v48 }
 0x30b   : > { %v856_v49 = vpop.f32.mrb[2].mxu0 }
 0x30c   : > { %860 = vst [vmem:[#allocation5] sm:$0x1] %v856_v49  ;;  %v1286_v50 = vpop.f32.mrb[3].mxu0 }
 0x30f   : > { %v931_v51 = vpop.f32.mrb[2].mxu1 }
 0x310   : > { %935 = vst [vmem:[#allocation6] sm:$0x1] %v931_v51  ;;  %v1291_v52 = vpop.f32.mrb[3].mxu1 }
 0x311 PF: > { %p1105_p5 = scmp.ne.s32.totalorder %s1527_s25, 1 }
 0x312   : > { %s939_s14 = scalar_lea.vmem (!%p1105_p5), [#allocation2], %s1063_s20 }
 0x313   : > { %938 = sbr.rel (%p1105_p5) target bundleno = 797 (0x31d), region = 60  ;;  %v1106_v53 = vld [vmem:[#allocation5] ss:$0 sm:$0xff] (!%p1105_p5)  ;;  %v941_v56 = vld [vmem:[%s939_s14 + $0x8] sm:$0xff] (!%p1105_p5) }
 0x314   : > { %v940_v54 = vld [vmem:[%s939_s14] sm:$0xff] (!%p1105_p5)  ;;  %v950_v58 = vmul.f32 (!%p1105_p5), %v1106_v53, %v941_v56 }
 0x315   : > { %v949_v57 = vmul.f32 (!%p1105_p5), %v1106_v53, %v940_v54 }
 0x317   : > { %v1107_v55 = vld [vmem:[#allocation6] ss:$0 sm:$0xff] (!%p1105_p5) }
 0x318   : > { %v958_v59 = vadd.f32 (!%p1105_p5), %v1107_v55, %v949_v57  ;;  %v959_v60 = vadd.f32 (!%p1105_p5), %v1107_v55, %v950_v58 }
 0x31a   : > { %v960_v61 = vmax.f32 %v958_v59, 0.0  ;;  %v961_v62 = vmax.f32 %v959_v60, 0.0 }
 0x31c   : > { %962 = vst [vmem:[%s1671_s13] sm:$0xff] %v960_v61  ;;  %963 = vst [vmem:[%s1671_s13 + $0x8] sm:$0xff] %v961_v62 }
 0x31d PF: > { %s972_s16 = smul.u32 %s1523_s24, %s1527_s25  ;;  %s979_s17 = sshll.u32 %s1671_s13, 4  ;;  %s1844_s17 = int_to_ptr.vmem [resolvable:$true] %s979_s17 }
 0x31e   : > { %s1915_s30 = sand.u32 1, %s1515_s22   ;;  %s1445_s9 = scalar_lea.vmem %s1844_s17, 256 }
 0x31f   : > { %s1113_s20 = sshll.u32 %s972_s16, 8  ;;  %s1853_s12 = scalar_lea.sflag [#allocation8], %s1915_s30 }
 0x320   : > { %s1849_s29 = scalar_lea.hbm %s1911_s6, %s1113_s20  ;;  %p1446_p7 = scmp.ne.s32.totalorder %s1844_s17, %s1445_s9 }
 0x321   : > { %s1547_s24 = smov [#allocation7]  }
 0x322   : > { %p1447_p9 = pnand %p1446_p7, %p1638_p6  ;;  %s1449_s25 = sshll.u32 %s1547_s24, 4  ;;  %s1450_s25 = int_to_ptr.vmem [resolvable:$false] %s1449_s25 }
 0x323   : > { %s1451_s13 = scalar_lea.vmem %s1450_s25, 512  ;;  %p1452_p11 = scmp.lt.s32.totalorder %s1844_s17, %s1450_s25 }
 0x324   : > { %p1448_p10 = pneg %p1447_p9  ;;  %p1453_p12 = scmp.lt.s32.totalorder %s1451_s13, %s1445_s9 }
 0x326   : > { %p1454_p13 = por %p1453_p12, %p1452_p11 }
 0x328   : > { %p1455_p0 = pnand %p1454_p13, %p1448_p10 }
 0x32a   : > { %1458 = shalt.err (!%p1455_p0)
}
 0x32b   : > { %s1459_s14 = scalar_lea.hbm %s1849_s29, 256  ;;  %s1463_s18 = scalar_lea.hbm %s1911_s6, 512 }
 0x32c   : > { %p1460_p1 = scmp.ne.s32.totalorder %s1849_s29, %s1459_s14  ;;  %p1464_p4 = scmp.lt.u32.totalorder %s1849_s29, %s1911_s6 }
 0x32d   : > { %p1465_p5 = scmp.lt.u32.totalorder %s1463_s18, %s1459_s14  ;;  %p1467_p9 = scmp.lt.u32.totalorder %s1459_s14, %s1849_s29 }
 0x32e   : > { %p1461_p2 = pnand %p1460_p1, %p1638_p6 }
 0x32f   : > { %p1466_p7 = por %p1465_p5, %p1464_p4 }
 0x330   : > { %p1462_p3 = pneg %p1461_p2 }
 0x331   : > { %p1468_p10 = por %p1467_p9, %p1466_p7 }
 0x333   : > { %p1469_p11 = pnand %p1468_p10, %p1462_p3 }
 0x335   : > { %1472 = shalt.err (!%p1469_p11)
}
 0x336   : > { %s1548_s9 = smov 128   ;;  %s1549_s24 = smov 8  }
 0x337   : > { %1347 = dma.vmem_to_hbm [thread:$0]  (%p1638_p6), %s1844_s17, 256, %s1849_s29, %s1853_s12, %s1548_s9, %s1548_s9, %s1549_s24  }
 0x338 PF: > { %p1353_p12 = scmp.ge.s32.totalorder %s1539_s28, 2  ;;  %s994_s25 = sand.u32 1, %s1511_s21  }
 0x339   : > { %s995_s13 = scalar_lea.sflag [#allocation8], %s994_s25 }
 0x33a   : > { %p1350_p13 = pnand %p1353_p12, %p1645_p8 }
 0x33c   : > { %1506 = dma.done.wait (!%p1350_p13), %s995_s13, 256  }
 0x33d   : > { %1508 = vsyncadd (!%p1350_p13), %s995_s13, 4294967040  ;;  %s19_s28 = sadd.s32 1, %s1539_s28   ;;  %s1916_s21 = smov %s1515_s22 }
 0x33e   : > { %p16_p0 = scmp.ge.s32.totalorder %s19_s28, 6   ;;  %s1917_s22 = smov %s1519_s23 }
 0x33f   : > { %s1918_s23 = smov %s1654_s15  ;;  %s1919_s24 = smov %s1531_s26 }
 0x340   : > { %s1920_s25 = smov %s1535_s27  ;;  %s1921_s26 = smov %s1924_s7 }
 0x341   : > { %s1922_s27 = smov %s1928_s8  ;;  %18 = sbr.rel (!%p16_p0) target bundleno = 5 (0x5), region = 99 }
 0x348   :  { %1000 = vsyncpa [#allocation8], 1 }
 0x349   :  { %1002 = vsyncpa [#allocation8 + $0x1], 1 }

</bundles_post_ra>
